<compile_context>
chip_gen: v7x
topology: tpu7x:2x2x1
jax: 0.10.0
libtpu: 0.0.40
codegen_flags: <defaults>
</compile_context>

<pallas_src>
import jax
import jax.numpy as jnp
from jax import lax
from jax.experimental import pallas as pl
from jax.experimental.pallas import tpu as pltpu

EPS = 1e-5  # nn.BatchNorm2d default


# --------------------------------------------------------------------------- #
# Fused single-call kernel: everything resident in VMEM (small problems).     #
# --------------------------------------------------------------------------- #
def _make_fused_kernel(n_batch, c_out, inv_count):
    def kernel(x_ref, w_ref, b_ref, g_ref, bt_ref, o_ref, y_sc):
        # x_ref: (N, Cin, HW)  w_ref: (Cout, Cin)  b/g/bt: (Cout, 1)
        # o_ref: (N, Cout, HW) y_sc:  (N, Cout, HW) f32 scratch
        w = w_ref[...]
        b = b_ref[...]
        acc_s = jnp.zeros((c_out, 1), jnp.float32)
        acc_q = jnp.zeros((c_out, 1), jnp.float32)
        for n in range(n_batch):  # static unroll; this path is small-N only
            y = jnp.dot(w, x_ref[n], preferred_element_type=jnp.float32)
            y = jnp.maximum(y + b, 0.0)                      # bias + ReLU
            y_sc[n] = y
            acc_s = acc_s + jnp.sum(y, axis=1, keepdims=True)
            acc_q = acc_q + jnp.sum(y * y, axis=1, keepdims=True)
        mean = acc_s * inv_count
        var = acc_q * inv_count - mean * mean                # biased (train-mode) var
        inv_std = lax.rsqrt(var + EPS)                       # EUP slot, ~free
        scale = g_ref[...] * inv_std
        shift = bt_ref[...] - mean * scale
        for n in range(n_batch):
            o_ref[n] = (y_sc[n] * scale + shift).astype(o_ref.dtype)

    return kernel


# --------------------------------------------------------------------------- #
# Two-phase tiled path (large problems).                                      #
# --------------------------------------------------------------------------- #
def _make_stats_kernel(c_out, tile_m, hw_real, padded):
    def kernel(x_ref, w_ref, b_ref, sum_ref, sq_ref):
        # x_ref: (1, Cin, TM); sum_ref/sq_ref: (1, Cout, 1) per-batch partials,
        # resident across the spatial ("arbitrary") grid axis.
        @pl.when(pl.program_id(1) == 0)
        def _():
            sum_ref[...] = jnp.zeros_like(sum_ref)
            sq_ref[...] = jnp.zeros_like(sq_ref)

        y = jnp.dot(w_ref[...], x_ref[0], preferred_element_type=jnp.float32)
        y = jnp.maximum(y + b_ref[...], 0.0)                 # bias + ReLU
        if padded:
            # Padded tail lanes must not pollute the batch statistics
            # (relu(bias) is generally non-zero).
            lane = lax.broadcasted_iota(jnp.int32, (c_out, tile_m), 1)
            valid = (pl.program_id(1) * tile_m + lane) < hw_real
            y = jnp.where(valid, y, 0.0)
        sum_ref[0] += jnp.sum(y, axis=1, keepdims=True)
        sq_ref[0] += jnp.sum(y * y, axis=1, keepdims=True)

    return kernel


def _make_norm_kernel(inv_count):
    def kernel(x_ref, w_ref, b_ref, sum_ref, sq_ref, g_ref, bt_ref, o_ref):
        # Fold BN inside the kernel (removes the wrapper-side XLA fusion):
        # out = relu(conv(x)+b) * (gamma/std) + (beta - mean*gamma/std)
        mean = sum_ref[...] * inv_count                      # (Cout, 1)
        var = sq_ref[...] * inv_count - mean * mean
        inv_std = lax.rsqrt(var + EPS)                       # EUP slot
        scale = g_ref[...] * inv_std
        shift = bt_ref[...] - mean * scale
        y = jnp.dot(w_ref[...], x_ref[0], preferred_element_type=jnp.float32)
        y = jnp.maximum(y + b_ref[...], 0.0)
        o_ref[0] = (y * scale + shift).astype(o_ref.dtype)

    return kernel


def _choose_tile(hw, target):
    """Return (TM, HW_padded): TM divides HW_padded, HW_padded >= hw."""
    target = max(128, target - target % 128)
    if hw <= target:
        return hw, hw                       # single full-extent tile (always legal)
    if hw % 128 == 0:
        tm = min(hw, target)
        while hw % tm != 0:
            tm -= 128
        return tm, hw
    # Large, non-128-aligned extent: cap the tile, pad, mask the tail in stats.
    tm = target
    hw_pad = -(-hw // tm) * tm
    return tm, hw_pad


def basic_block(x_nchw, conv_w, conv_b, bn_gamma, bn_beta, *,
                tile_target=32768, fuse=None, conv_dtype=jnp.float32,
                fuse_vmem_budget=8 * 1024 * 1024):
    """x_nchw: (N, Cin, H, W); conv_w: (Cout, Cin, 1, 1); conv_b/bn_*: (Cout,)."""
    N, Cin, H, W = x_nchw.shape
    Cout = conv_w.shape[0]
    HW = H * W
    out_dtype = jnp.float32

    # Free, channels-first views (no data movement, no transposes).
    x3d = x_nchw.reshape(N, Cin, HW).astype(conv_dtype)
    w2d = conv_w.reshape(Cout, Cin).astype(conv_dtype)
    b2d = conv_b.reshape(Cout, 1).astype(jnp.float32)
    g2d = bn_gamma.reshape(Cout, 1).astype(jnp.float32)
    bt2d = bn_beta.reshape(Cout, 1).astype(jnp.float32)

    inv_count = 1.0 / float(N * HW)

    # Resident footprint of the fully fused kernel: x + f32 scratch + output.
    fused_bytes = (N * Cin * HW * jnp.dtype(conv_dtype).itemsize
                   + 2 * N * Cout * HW * 4)
    if fuse is None:
        fuse = fused_bytes <= fuse_vmem_budget

    if fuse:
        # ---- single fused call: conv+ReLU -> stats -> fold -> normalize ----
        vmem = pl.BlockSpec(memory_space=pltpu.MemorySpace.VMEM)
        out3d = pl.pallas_call(
            _make_fused_kernel(N, Cout, inv_count),
            out_shape=jax.ShapeDtypeStruct((N, Cout, HW), out_dtype),
            in_specs=[vmem, vmem, vmem, vmem, vmem],
            out_specs=vmem,
            scratch_shapes=[pltpu.VMEM((N, Cout, HW), jnp.float32)],
        )(x3d, w2d, b2d, g2d, bt2d)
        return out3d.reshape(N, Cout, H, W)

    # ---- two-phase tiled path ----
    TM, HWp = _choose_tile(HW, tile_target)
    padded = HWp != HW
    if padded:
        x3d = jnp.pad(x3d, ((0, 0), (0, 0), (0, HWp - HW)))
    n_m = HWp // TM
    grid = (N, n_m)

    # Phase 1: per-batch partial sum / sum-of-squares of relu(conv(x)+b).
    # Per-batch output blocks let both v7x TensorCores run the stats pass.
    # TODO(synk): for strict parity at very large N*HW, switch to a shifted
    # (centered) sum-of-squares to avoid E[y^2]-E[y]^2 cancellation.
    part_sum, part_sq = pl.pallas_call(
        _make_stats_kernel(Cout, TM, HW, padded),
        out_shape=(jax.ShapeDtypeStruct((N, Cout, 1), jnp.float32),
                   jax.ShapeDtypeStruct((N, Cout, 1), jnp.float32)),
        grid=grid,
        in_specs=[
            pl.BlockSpec((1, Cin, TM), lambda n, m: (n, 0, m)),
            pl.BlockSpec((Cout, Cin), lambda n, m: (0, 0)),
            pl.BlockSpec((Cout, 1), lambda n, m: (0, 0)),
        ],
        out_specs=(
            pl.BlockSpec((1, Cout, 1), lambda n, m: (n, 0, 0)),
            pl.BlockSpec((1, Cout, 1), lambda n, m: (n, 0, 0)),
        ),
        compiler_params=pltpu.CompilerParams(
            dimension_semantics=("parallel", "arbitrary")),
    )(x3d, w2d, b2d)

    stats_sum = jnp.sum(part_sum, axis=0)   # (Cout, 1) tiny wrapper reduce
    stats_sq = jnp.sum(part_sq, axis=0)

    # Phase 2: recompute the cheap conv+ReLU per tile, fold + apply BN inside
    # the kernel; output is produced lane-dense directly as (N, Cout, HW).
    out3d = pl.pallas_call(
        _make_norm_kernel(inv_count),
        out_shape=jax.ShapeDtypeStruct((N, Cout, HWp), out_dtype),
        grid=grid,
        in_specs=[
            pl.BlockSpec((1, Cin, TM), lambda n, m: (n, 0, m)),
            pl.BlockSpec((Cout, Cin), lambda n, m: (0, 0)),
            pl.BlockSpec((Cout, 1), lambda n, m: (0, 0)),
            pl.BlockSpec((Cout, 1), lambda n, m: (0, 0)),
            pl.BlockSpec((Cout, 1), lambda n, m: (0, 0)),
            pl.BlockSpec((Cout, 1), lambda n, m: (0, 0)),
            pl.BlockSpec((Cout, 1), lambda n, m: (0, 0)),
        ],
        out_specs=pl.BlockSpec((1, Cout, TM), lambda n, m: (n, 0, m)),
        compiler_params=pltpu.CompilerParams(
            dimension_semantics=("parallel", "parallel")),
    )(x3d, w2d, b2d, stats_sum, stats_sq, g2d, bt2d)

    if padded:
        out3d = out3d[:, :, :HW]
    return out3d.reshape(N, Cout, H, W)


def _reference(x_nchw, conv_w, conv_b, bn_gamma, bn_beta):
    # Pure-JAX reference: conv1x1 -> relu -> batchnorm (train mode, batch stats).
    y = jnp.einsum("nchw,oc->nohw", x_nchw, conv_w[:, :, 0, 0]) \
        + conv_b[None, :, None, None]
    y = jnp.maximum(y, 0.0)
    mean = jnp.mean(y, axis=(0, 2, 3), keepdims=True)
    var = jnp.mean((y - mean) ** 2, axis=(0, 2, 3), keepdims=True)
    return (y - mean) * lax.rsqrt(var + EPS) * bn_gamma[None, :, None, None] \
        + bn_beta[None, :, None, None]


if __name__ == "__main__":
    # Small shapes consistent with the module: input_size=4, output_size=8.
    N, Cin, H, W = 2, 4, 16, 16
    Cout = 8

    key = jax.random.PRNGKey(0)
    kx, kw, kb = jax.random.split(key, 3)
    x = jax.random.normal(kx, (N, Cin, H, W), dtype=jnp.float32)

    fan_in = Cin * 1 * 1
    bound = 1.0 / (fan_in ** 0.5)
    conv_w = jax.random.uniform(kw, (Cout, Cin, 1, 1), minval=-bound, maxval=bound,
                                dtype=jnp.float32)
    conv_b = jax.random.uniform(kb, (Cout,), minval=-bound, maxval=bound,
                                dtype=jnp.float32)
    bn_gamma = jnp.ones((Cout,), jnp.float32)   # BatchNorm2d default weight
    bn_beta = jnp.zeros((Cout,), jnp.float32)   # BatchNorm2d default bias

    ref = _reference(x, conv_w, conv_b, bn_gamma, bn_beta)

    # Path 1: fully fused single pallas_call (the path module-sized inputs take).
    out_fused = jax.block_until_ready(
        basic_block(x, conv_w, conv_b, bn_gamma, bn_beta))
    assert out_fused.shape == (N, Cout, H, W)
    assert jnp.allclose(out_fused, ref, atol=1e-4, rtol=1e-4), "fused path mismatch"

    # Path 2: two-phase tiled path, forced with a small tile so the resident
    # per-batch stats accumulators and the pl.when init are actually exercised.
    out_tiled = jax.block_until_ready(
        basic_block(x, conv_w, conv_b, bn_gamma, bn_beta,
                    fuse=False, tile_target=128))
    assert jnp.allclose(out_tiled, ref, atol=1e-4, rtol=1e-4), "tiled path mismatch"

    print("KERNEL_OK")
</pallas_src>

<mosaic_0001>
module attributes {stable_mosaic.version = 11 : i64} {
  func.func @kernel(%arg0: memref<2x4x256xf32, #tpu.memory_space<vmem>>, %arg1: memref<8x4xf32, #tpu.memory_space<vmem>>, %arg2: memref<8x1xf32, #tpu.memory_space<vmem>>, %arg3: memref<8x1xf32, #tpu.memory_space<vmem>>, %arg4: memref<8x1xf32, #tpu.memory_space<vmem>>, %arg5: memref<2x8x256xf32, #tpu.memory_space<vmem>>, %arg6: memref<2x8x256xf32, #tpu.memory_space<vmem>>) attributes {dimension_semantics = [], scalar_prefetch = 0 : i64, scratch_operands = 1 : i64, tpu.core_type = #tpu.core_type<tc>} {
    %c0 = arith.constant 0 : index
    %c0_0 = arith.constant 0 : index
    %0 = vector.load %arg1[%c0, %c0_0] : memref<8x4xf32, #tpu.memory_space<vmem>>, vector<8x4xf32>
    %c0_1 = arith.constant 0 : index
    %c0_2 = arith.constant 0 : index
    %1 = vector.load %arg2[%c0_1, %c0_2] : memref<8x1xf32, #tpu.memory_space<vmem>>, vector<8x1xf32>
    %cst = arith.constant 0.000000e+00 : f32
    %2 = vector.broadcast %cst : f32 to vector<8x1xf32>
    %cst_3 = arith.constant 0.000000e+00 : f32
    %3 = vector.broadcast %cst_3 : f32 to vector<8x1xf32>
    %c0_4 = arith.constant 0 : index
    %c0_5 = arith.constant 0 : index
    %c0_6 = arith.constant 0 : index
    %4 = vector.load %arg0[%c0_4, %c0_5, %c0_6] : memref<2x4x256xf32, #tpu.memory_space<vmem>>, vector<1x4x256xf32>
    %5 = vector.shape_cast %4 : vector<1x4x256xf32> to vector<4x256xf32>
    %cst_7 = arith.constant dense<0.000000e+00> : vector<8x256xf32>
    %6 = tpu.matmul %0, %5, %cst_7 {dimension_numbers = #tpu.dot_dimension_numbers<[1], [0], [0], [1], [0, 0, 1, 1], [], []>} : vector<8x4xf32>, vector<4x256xf32>, vector<8x256xf32> -> vector<8x256xf32>
    %7 = vector.broadcast %1 : vector<8x1xf32> to vector<8x256xf32>
    %8 = arith.addf %6, %7 : vector<8x256xf32>
    %cst_8 = arith.constant 0.000000e+00 : f32
    %9 = vector.broadcast %cst_8 : f32 to vector<8x256xf32>
    %10 = arith.maximumf %8, %9 : vector<8x256xf32>
    %c0_9 = arith.constant 0 : index
    %c0_10 = arith.constant 0 : index
    %c0_11 = arith.constant 0 : index
    %11 = vector.load %arg6[%c0_9, %c0_10, %c0_11] : memref<2x8x256xf32, #tpu.memory_space<vmem>>, vector<1x8x256xf32>
    %12 = vector.shape_cast %11 : vector<1x8x256xf32> to vector<8x256xf32>
    %13 = vector.shape_cast %10 : vector<8x256xf32> to vector<1x8x256xf32>
    tpu.vector_store %arg6[%c0_9, %c0_10, %c0_11], %13 {strides = array<i32>} : memref<2x8x256xf32, #tpu.memory_space<vmem>>, vector<1x8x256xf32>,
    %cst_12 = arith.constant dense<0.000000e+00> : vector<8xf32>
    %14 = vector.multi_reduction <add>, %10, %cst_12 [1] : vector<8x256xf32> to vector<8xf32>
    %15 = vector.shape_cast %14 : vector<8xf32> to vector<8x1xf32>
    %16 = arith.addf %2, %15 : vector<8x1xf32>
    %17 = arith.mulf %10, %10 : vector<8x256xf32>
    %cst_13 = arith.constant dense<0.000000e+00> : vector<8xf32>
    %18 = vector.multi_reduction <add>, %17, %cst_13 [1] : vector<8x256xf32> to vector<8xf32>
    %19 = vector.shape_cast %18 : vector<8xf32> to vector<8x1xf32>
    %20 = arith.addf %3, %19 : vector<8x1xf32>
    %c1 = arith.constant 1 : index
    %c0_14 = arith.constant 0 : index
    %c0_15 = arith.constant 0 : index
    %21 = vector.load %arg0[%c1, %c0_14, %c0_15] : memref<2x4x256xf32, #tpu.memory_space<vmem>>, vector<1x4x256xf32>
    %22 = vector.shape_cast %21 : vector<1x4x256xf32> to vector<4x256xf32>
    %cst_16 = arith.constant dense<0.000000e+00> : vector<8x256xf32>
    %23 = tpu.matmul %0, %22, %cst_16 {dimension_numbers = #tpu.dot_dimension_numbers<[1], [0], [0], [1], [0, 0, 1, 1], [], []>} : vector<8x4xf32>, vector<4x256xf32>, vector<8x256xf32> -> vector<8x256xf32>
    %24 = vector.broadcast %1 : vector<8x1xf32> to vector<8x256xf32>
    %25 = arith.addf %23, %24 : vector<8x256xf32>
    %cst_17 = arith.constant 0.000000e+00 : f32
    %26 = vector.broadcast %cst_17 : f32 to vector<8x256xf32>
    %27 = arith.maximumf %25, %26 : vector<8x256xf32>
    %c1_18 = arith.constant 1 : index
    %c0_19 = arith.constant 0 : index
    %c0_20 = arith.constant 0 : index
    %28 = vector.load %arg6[%c1_18, %c0_19, %c0_20] : memref<2x8x256xf32, #tpu.memory_space<vmem>>, vector<1x8x256xf32>
    %29 = vector.shape_cast %28 : vector<1x8x256xf32> to vector<8x256xf32>
    %30 = vector.shape_cast %27 : vector<8x256xf32> to vector<1x8x256xf32>
    tpu.vector_store %arg6[%c1_18, %c0_19, %c0_20], %30 {strides = array<i32>} : memref<2x8x256xf32, #tpu.memory_space<vmem>>, vector<1x8x256xf32>,
    %cst_21 = arith.constant dense<0.000000e+00> : vector<8xf32>
    %31 = vector.multi_reduction <add>, %27, %cst_21 [1] : vector<8x256xf32> to vector<8xf32>
    %32 = vector.shape_cast %31 : vector<8xf32> to vector<8x1xf32>
    %33 = arith.addf %16, %32 : vector<8x1xf32>
    %34 = arith.mulf %27, %27 : vector<8x256xf32>
    %cst_22 = arith.constant dense<0.000000e+00> : vector<8xf32>
    %35 = vector.multi_reduction <add>, %34, %cst_22 [1] : vector<8x256xf32> to vector<8xf32>
    %36 = vector.shape_cast %35 : vector<8xf32> to vector<8x1xf32>
    %37 = arith.addf %20, %36 : vector<8x1xf32>
    %cst_23 = arith.constant 0.001953125 : f32
    %38 = vector.broadcast %cst_23 : f32 to vector<8x1xf32>
    %39 = arith.mulf %33, %38 : vector<8x1xf32>
    %cst_24 = arith.constant 0.001953125 : f32
    %40 = vector.broadcast %cst_24 : f32 to vector<8x1xf32>
    %41 = arith.mulf %37, %40 : vector<8x1xf32>
    %42 = arith.mulf %39, %39 : vector<8x1xf32>
    %43 = arith.subf %41, %42 : vector<8x1xf32>
    %cst_25 = arith.constant 9.99999974E-6 : f32
    %44 = vector.broadcast %cst_25 : f32 to vector<8x1xf32>
    %45 = arith.addf %43, %44 : vector<8x1xf32>
    %46 = math.rsqrt %45 : vector<8x1xf32>
    %c0_26 = arith.constant 0 : index
    %c0_27 = arith.constant 0 : index
    %47 = vector.load %arg3[%c0_26, %c0_27] : memref<8x1xf32, #tpu.memory_space<vmem>>, vector<8x1xf32>
    %48 = arith.mulf %47, %46 : vector<8x1xf32>
    %c0_28 = arith.constant 0 : index
    %c0_29 = arith.constant 0 : index
    %49 = vector.load %arg4[%c0_28, %c0_29] : memref<8x1xf32, #tpu.memory_space<vmem>>, vector<8x1xf32>
    %50 = arith.mulf %39, %48 : vector<8x1xf32>
    %51 = arith.subf %49, %50 : vector<8x1xf32>
    %c0_30 = arith.constant 0 : index
    %c0_31 = arith.constant 0 : index
    %c0_32 = arith.constant 0 : index
    %52 = vector.load %arg6[%c0_30, %c0_31, %c0_32] : memref<2x8x256xf32, #tpu.memory_space<vmem>>, vector<1x8x256xf32>
    %53 = vector.shape_cast %52 : vector<1x8x256xf32> to vector<8x256xf32>
    %54 = vector.broadcast %48 : vector<8x1xf32> to vector<8x256xf32>
    %55 = arith.mulf %53, %54 : vector<8x256xf32>
    %56 = vector.broadcast %51 : vector<8x1xf32> to vector<8x256xf32>
    %57 = arith.addf %55, %56 : vector<8x256xf32>
    %c0_33 = arith.constant 0 : index
    %c0_34 = arith.constant 0 : index
    %c0_35 = arith.constant 0 : index
    %58 = vector.load %arg5[%c0_33, %c0_34, %c0_35] : memref<2x8x256xf32, #tpu.memory_space<vmem>>, vector<1x8x256xf32>
    %59 = vector.shape_cast %58 : vector<1x8x256xf32> to vector<8x256xf32>
    %60 = vector.shape_cast %57 : vector<8x256xf32> to vector<1x8x256xf32>
    tpu.vector_store %arg5[%c0_33, %c0_34, %c0_35], %60 {strides = array<i32>} : memref<2x8x256xf32, #tpu.memory_space<vmem>>, vector<1x8x256xf32>,
    %c1_36 = arith.constant 1 : index
    %c0_37 = arith.constant 0 : index
    %c0_38 = arith.constant 0 : index
    %61 = vector.load %arg6[%c1_36, %c0_37, %c0_38] : memref<2x8x256xf32, #tpu.memory_space<vmem>>, vector<1x8x256xf32>
    %62 = vector.shape_cast %61 : vector<1x8x256xf32> to vector<8x256xf32>
    %63 = vector.broadcast %48 : vector<8x1xf32> to vector<8x256xf32>
    %64 = arith.mulf %62, %63 : vector<8x256xf32>
    %65 = vector.broadcast %51 : vector<8x1xf32> to vector<8x256xf32>
    %66 = arith.addf %64, %65 : vector<8x256xf32>
    %c1_39 = arith.constant 1 : index
    %c0_40 = arith.constant 0 : index
    %c0_41 = arith.constant 0 : index
    %67 = vector.load %arg5[%c1_39, %c0_40, %c0_41] : memref<2x8x256xf32, #tpu.memory_space<vmem>>, vector<1x8x256xf32>
    %68 = vector.shape_cast %67 : vector<1x8x256xf32> to vector<8x256xf32>
    %69 = vector.shape_cast %66 : vector<8x256xf32> to vector<1x8x256xf32>
    tpu.vector_store %arg5[%c1_39, %c0_40, %c0_41], %69 {strides = array<i32>} : memref<2x8x256xf32, #tpu.memory_space<vmem>>, vector<1x8x256xf32>,
    return
  }
}

</mosaic_0001>

<bundles_post_ra>
// kernel: tpu_custom_call.1
= control target key start
LH: loop header
LB: loop body
LE: loop exit
PB: predicated region body
PF: predicated region fallthrough
CT: control target
= control target key end

     0   :  { %vm35_vm0 = vcmask 1043456   ;;  %v315_v4 = vmov 0.0   ;;  %s384_s0 = inlined_call_operand.vmem [shape: f32[2,4,256], index: 0, kind: input, shape index: {}]   ;;  %s385_s1 = inlined_call_operand.vmem [shape: f32[8,4], index: 1, kind: input, shape index: {}]   ;;  %s386_s2 = inlined_call_operand.vmem [shape: f32[8,1], index: 2, kind: input, shape index: {}]   ;;  %s387_s3 = inlined_call_operand.vmem [shape: f32[8,1], index: 3, kind: input, shape index: {}]   ;;  %s388_s4 = inlined_call_operand.vmem [shape: f32[8,1], index: 4, kind: input, shape index: {}]   ;;  %s389_s5 = inlined_call_operand.hbm [shape: f32[2,8,256], index: 5, kind: output, shape index: {}]  }
   0x1   :  { %v23_v0 = vld [vmem:[%s384_s0] sm:$0xff]  ;;  %v276_v1 = vld [vmem:[%s384_s0 + $0x8] sm:$0xff]  ;;  %104 = vmatprep.mubr.f32.mxu0 %v315_v4  ;;  %197 = vmatprep.mubr.f32.mxu1 %v315_v4 }
   0x2   :  { %v30_v2 = vcombine.high %v23_v0, %v23_v0  ;;  %v128_v3 = vcombine.high %v276_v1, %v276_v1 }
   0x3   :  { %10 = vsyncpa [#allocation4], 0  ;;  %v21_v5 = vld [vmem:[%s385_s1] sm:$0xff]  ;;  %vm31_vm1 = vcmask 31744   ;;  %v316_v6 = vmov 0   ;;  %s317_s27 = smov [#allocation3]  }
   0x4   :  { %285 = vset.pattern.permute.xlu0 %v316_v6  ;;  %286 = vset.pattern.permute.xlu1 %v316_v6  ;;  %v22_v7 = vld [vmem:[%s386_s2] sm:$0xff]  ;;  %s262_s28 = sshll.u32 %s317_s27, 4  ;;  %s263_s28 = int_to_ptr.vmem [resolvable:$true] %s262_s28 }
   0x5   :  { %273 = vmatprep.subr.msk.mxu0 %vm35_vm0, %v30_v2  ;;  %277 = vmatprep.subr.msk.mxu1 %vm35_vm0, %v128_v3  ;;  %v225_v40 = vld [vmem:[%s387_s3] sm:$0xff]  ;;  %s291_s3 = scalar_lea.vmem %s263_s28, 512  ;;  %p296_p1 = scmp.lt.s32.totalorder %s263_s28, %s263_s28 }
   0x6   :  { %274 = vmatpush1.msk.msra.mxu0 %vm35_vm0, %v23_v0  ;;  %278 = vmatpush1.msk.msra.mxu1 %vm35_vm0, %v276_v1  ;;  %v227_v43 = vld [vmem:[%s388_s4] sm:$0xff]  ;;  %p292_p0 = scmp.ne.s32.totalorder %s263_s28, %s291_s3  ;;  %p297_p2 = scmp.lt.s32.totalorder %s291_s3, %s291_s3 }
   0x7   :  { %275 = vmatmul.mubr.msk.f32.vlgmr.msra.gmra.mrb[0].mxu0 %vm31_vm1, %v21_v5  ;;  %279 = vmatmul.mubr.msk.f32.vlgmr.msra.gmra.mrb[0].mxu1 %vm31_vm1, %v21_v5 }
   0x8   :  { %26 = vperm.xlu0 %285, %v22_v7   ;;  %p298_p3 = por %p297_p2, %p296_p1 }
   0xa   :  { %p299_p4 = pnand %p298_p3, %p292_p0 }
  0x87   :  { %v27_v8 = vpop.permute.xlu0 %26 }
  0xda   :  { %v106_v9 = vpop.f32.mrb[0].mxu0  ;;  %v199_v10 = vpop.f32.mrb[0].mxu1 }
  0xdb   :  { %v107_v11 = vadd.f32 %v106_v9, %v27_v8  ;;  %v200_v12 = vadd.f32 %v199_v10, %v27_v8  ;;  %v108_v13 = vpop.f32.mrb[1].mxu0  ;;  %v201_v14 = vpop.f32.mrb[1].mxu1 }
  0xdc   :  { %v109_v15 = vadd.f32 %v108_v13, %v27_v8  ;;  %v202_v16 = vadd.f32 %v201_v14, %v27_v8 }
  0xdd   :  { %v111_v17 = vmax.f32 %v107_v11, 0.0  ;;  %v204_v18 = vmax.f32 %v200_v12, 0.0 }
  0xde   :  { %v112_v19 = vmax.f32 %v109_v15, 0.0  ;;  %v205_v20 = vmax.f32 %v202_v16, 0.0 }
  0xdf   :  { %v119_v23 = vmul.f32 %v111_v17, %v111_v17  ;;  %v213_v26 = vmul.f32 %v204_v18, %v204_v18 }
  0xe0   :  { %v209_v21 = vadd.f32 %v205_v20, %v204_v18  ;;  %v115_v22 = vadd.f32 %v112_v19, %v111_v17  ;;  %v120_v24 = vmul.f32 %v112_v19, %v112_v19  ;;  %v214_v27 = vmul.f32 %v205_v20, %v205_v20 }
  0xe2   :  { %210 = vadd.xlane.f32.xlu1 %v209_v21  ;;  %116 = vadd.xlane.f32.xlu0 %v115_v22  ;;  %v121_v25 = vadd.f32 %v120_v24, %v119_v23  ;;  %v215_v28 = vadd.f32 %v214_v27, %v213_v26 }
  0xe6   :  { %122 = vadd.xlane.f32.xlu1 %v121_v25 }
  0xea   :  { %216 = vadd.xlane.f32.xlu1 %v215_v28 }
 0x16f   :  { %v211_v29 = vpop.xlane.xlu1 %210  ;;  %v117_v30 = vpop.xlane.xlu0 %116 }
 0x170   :  { %v212_v31 = vadd.f32 %v211_v29, %v117_v30 }
 0x172   :  { %v219_v33 = vmul.f32 0.001953125, %v212_v31 }
 0x173   :  { %v123_v32 = vpop.xlane.xlu1 %122 }
 0x174   :  { %v221_v36 = vmul.f32 %v219_v33, %v219_v33 }
 0x177   :  { %v217_v34 = vpop.xlane.xlu1 %216 }
 0x178   :  { %v218_v35 = vadd.f32 %v217_v34, %v123_v32 }
 0x17a   :  { %v220_v37 = vmul.f32 0.001953125, %v218_v35 }
 0x17c   :  { %v222_v38 = vsub.f32 %v220_v37, %v221_v36 }
 0x17e   :  { %v223_v39 = vadd.f32 1e-05, %v222_v38 }
 0x180   :  { %289 = vrsqrt.f32 %v223_v39 }
 0x18a   :  { %v290_v41 = vpop.eup %289 }
 0x18b   :  { %v226_v42 = vmul.f32 %v290_v41, %v225_v40 }
 0x18d   :  { %234 = vperm.xlu1 %286, %v226_v42   ;;  %v228_v44 = vmul.f32 %v226_v42, %v219_v33 }
 0x18f   :  { %v229_v45 = vsub.f32 %v227_v43, %v228_v44 }
 0x191   :  { %241 = vperm.xlu1 %286, %v229_v45  }
 0x20c   :  { %v235_v46 = vpop.permute.xlu1 %234 }
 0x20d   :  { %v237_v47 = vmul.f32 %v235_v46, %v111_v17  ;;  %v238_v48 = vmul.f32 %v235_v46, %v112_v19  ;;  %v250_v49 = vmul.f32 %v235_v46, %v204_v18  ;;  %v251_v50 = vmul.f32 %v235_v46, %v205_v20 }
 0x210   :  { %v242_v51 = vpop.permute.xlu1 %241 }
 0x211   :  { %v244_v52 = vadd.f32 %v242_v51, %v237_v47  ;;  %v245_v53 = vadd.f32 %v242_v51, %v238_v48  ;;  %v252_v54 = vadd.f32 %v250_v49, %v242_v51  ;;  %v253_v55 = vadd.f32 %v251_v50, %v242_v51 }
 0x213   :  { %246 = vst [vmem:[#allocation3] sm:$0xff] %v244_v52  ;;  %247 = vst [vmem:[#allocation3 + $0x8] sm:$0xff] %v245_v53 }
 0x214   :  { %255 = vst [vmem:[#allocation3 + $0x10] sm:$0xff] %v252_v54  ;;  %256 = vst [vmem:[#allocation3 + $0x18] sm:$0xff] %v253_v55 }
 0x215   :  { %302 = shalt.err (!%p299_p4)
}
 0x216   :  { %s303_s30 = scalar_lea.hbm %s389_s5, 512 }
 0x217   :  { %p304_p5 = scmp.ne.s32.totalorder %s389_s5, %s303_s30  ;;  %p307_p6 = scmp.lt.u32.totalorder %s303_s30, %s389_s5 }
 0x219   :  { %p309_p7 = pnand %p307_p6, %p304_p5 }
 0x21b   :  { %312 = shalt.err (!%p309_p7)
}
 0x21c   :  { %s318_s10 = smov 256   ;;  %s319_s11 = smov 16  }
 0x21d   :  { %268 = dma.vmem_to_hbm [thread:$0]  %s263_s28, 512, %s389_s5, [#allocation4], %s318_s10, %s318_s10, %s319_s11  }
 0x21e   :  { %313 = dma.done.wait [#allocation4], 512  }
 0x21f   :  { %314 = vsyncadd [#allocation4], 4294966784 }
 0x220   :  { %272 = vsyncpa [#allocation4], 1 }

</bundles_post_ra>
